<compile_context>
chip_gen: v6e
topology: v6e:2x2x1
jax: 0.10.0
libtpu: 0.0.40
codegen_flags: <defaults>
</compile_context>

<pallas_src>
import functools

import jax
import jax.numpy as jnp
import numpy as np
from jax.experimental import pallas as pl
from jax.experimental.pallas import tpu as pltpu


# ---------------------------------------------------------------------------
# VMEM budgeting / tile selection (generation-aware)
# ---------------------------------------------------------------------------
def _vmem_budget():
    """Scoped-VMEM limit: physical capacity minus headroom for Mosaic internal scratch."""
    try:
        cap = int(pltpu.get_tpu_info().vmem_capacity_bytes)   # 128 MiB v5e/v6e, 64 MiB v7x
    except Exception:
        cap = 64 * 1024 * 1024
    return max(32 * 1024 * 1024, cap - 16 * 1024 * 1024)


def _pick_row_tile(n, preferred=2048):
    for t in (preferred, 2048, 1024, 512, 256, 128, 64, 32, 16, 8):
        if t <= n and n % t == 0:
            return t
    return n   # block == full array dims is always a legal BlockSpec


def _pick_dst_tile(n, hf, num_heads, attn_bytes, budget, preferred=512):
    """Largest dst tile whose per-grid-step resident bytes fit the scoped-VMEM budget.

    Per-step footprint (double-buffered pipeline blocks + live intermediates):
      fixed   ~ 2 * N*HF*4 (full-src h)  + small el/er + slack
      per-row ~ N * (2*2            adj bf16, double-buffered
                     + 2*H*attn_b   dense attention writeback, double-buffered (0 if off)
                     + 16)          ~4 live f32 [T, N] intermediates in the softmax chain
    """
    fixed = 2 * n * hf * 4 + 4 * n * num_heads * 4 + (2 << 20)
    per_row = n * (2 * 2 + 2 * num_heads * attn_bytes + 16)
    for t in (preferred, 1024, 512, 256, 128, 64, 32, 16, 8):
        if t <= n and n % t == 0 and t % 8 == 0 and fixed + t * per_row <= budget:
            return t
    # TODO(synk): streamed-src (online softmax) variant removes the full-src residency
    # requirement; needed once even dst_tile=8 overflows the VMEM budget.
    raise ValueError(
        f"attend tile does not fit the VMEM budget ({budget} B) at N={n}; "
        "a streamed-src variant is required at this scale.")


# ---------------------------------------------------------------------------
# Kernel 1: proj = x @ [W | W@A]   (h and per-head el/er scores from one matmul)
# ---------------------------------------------------------------------------
def gat_project_kernel(x_ref, w_ref, proj_ref):
    proj_ref[...] = jnp.dot(x_ref[...], w_ref[...], preferred_element_type=jnp.float32)


def _project(x, w_full, *, row_tile, vmem_limit):
    N, in_dim = x.shape
    cols = w_full.shape[1]
    cost = pl.CostEstimate(
        flops=2 * N * in_dim * cols, transcendentals=0,
        bytes_accessed=4 * (N * in_dim + in_dim * cols + N * cols))
    return pl.pallas_call(
        gat_project_kernel,
        out_shape=jax.ShapeDtypeStruct((N, cols), jnp.float32),
        grid=(N // row_tile,),
        in_specs=[pl.BlockSpec((row_tile, in_dim), lambda r: (r, 0)),
                  pl.BlockSpec((in_dim, cols), lambda r: (0, 0))],
        out_specs=pl.BlockSpec((row_tile, cols), lambda r: (r, 0)),
        compiler_params=pltpu.CompilerParams(
            dimension_semantics=("parallel",),
            vmem_limit_bytes=vmem_limit),
        cost_estimate=cost,
    )(x, w_full)


# ---------------------------------------------------------------------------
# Kernel 2: edge softmax + aggregation, dst-major, all heads per dst tile
# ---------------------------------------------------------------------------
def _attend_heads(h_ref, el_ref, er_ref, adj_ref, out_ref, attn_ref, *,
                  neg_slope, num_heads, out_feats):
    mask_neg = float(jnp.finfo(jnp.float32).min) * 0.5   # dtype-aware "minus infinity"
    mask = adj_ref[...] > 0                   # bf16 0/1 adjacency -> bool [T_dst, N_src]
    el = el_ref[...]                          # [H, N_src]  source scores (src on lanes)
    er = er_ref[...]                          # [T_dst, H]  destination scores
    h_src = h_ref[...]                        # [N_src, H*F]
    outs = []
    for hd in range(num_heads):               # static unroll over heads
        e = er[:, hd:hd + 1] + el[hd:hd + 1, :]                       # [T_dst, N_src]
        # fused leaky_relu + adjacency mask: one select instead of two VPU passes
        e = jnp.where(mask, jnp.maximum(e, neg_slope * e), mask_neg)
        e = e - jnp.max(e, axis=-1, keepdims=True)                    # lane reduce (XLU)
        p = jnp.exp(e)                                                # EUP; masked -> 0
        # self-loops guarantee in-degree >= 1 (DGL raises otherwise) -> no zero guard;
        # approx reciprocal rides the EUP slot (rows sum to 1 within ~1e-3).
        a = p * pl.reciprocal(jnp.sum(p, axis=-1, keepdims=True), approx=True)
        if attn_ref is not None:
            attn_ref[hd] = a.astype(attn_ref.dtype)                   # lane-dense [T, N]
        # transpose-free aggregation: contraction over N_src feeds the MXU directly
        outs.append(jnp.dot(a, h_src[:, hd * out_feats:(hd + 1) * out_feats],
                            preferred_element_type=jnp.float32))
    # single lane-dense [T_dst, H*F] store instead of H narrow masked stores
    out_ref[...] = jnp.concatenate(outs, axis=-1).astype(out_ref.dtype)


def gat_attend_kernel(h_ref, el_ref, er_ref, adj_ref, out_ref, attn_ref, *,
                      neg_slope, num_heads, out_feats):
    _attend_heads(h_ref, el_ref, er_ref, adj_ref, out_ref, attn_ref,
                  neg_slope=neg_slope, num_heads=num_heads, out_feats=out_feats)


def gat_attend_kernel_noattn(h_ref, el_ref, er_ref, adj_ref, out_ref, *,
                             neg_slope, num_heads, out_feats):
    _attend_heads(h_ref, el_ref, er_ref, adj_ref, out_ref, None,
                  neg_slope=neg_slope, num_heads=num_heads, out_feats=out_feats)


# ---------------------------------------------------------------------------
# Wrapper
# ---------------------------------------------------------------------------
def custom_gat_layer(x, adj, w, attn_l, attn_r, *, num_heads, out_feats,
                     neg_slope=0.2, adj_layout="src_dst",
                     return_attention=False, attn_dtype=jnp.float32,
                     row_tile=None, dst_tile=None):
    """GAT forward (eval mode).

    adj_layout="src_dst": adj[u, v] = 1 iff edge u -> v (DGL orientation).
    adj_layout="dst_src": adj is already destination-major (adj[v, u]); pass this for
        static graphs so the O(N^2) transpose is hoisted out of the layer.
    attn_dtype: dtype of the optional dense attention output (bf16 halves its writeback).
    Returns (h_out [N, H*F], attn [H, N_dst, N_src] or None).
    """
    N, in_dim = x.shape
    H, F = num_heads, out_feats
    HF = H * F
    assert N % 8 == 0, "N must be a multiple of 8"  # TODO(synk): padding path for ragged N

    # Pack attn_l / attn_r into a block-diagonal [HF, 2H] matrix and fold it into the
    # projection weight: one matmul x @ [W | W@A] yields h and the per-head el/er scores.
    eye = jnp.eye(H, dtype=jnp.float32)
    a_l = (attn_l.astype(jnp.float32)[:, :, None] * eye[:, None, :]).reshape(HF, H)
    a_r = (attn_r.astype(jnp.float32)[:, :, None] * eye[:, None, :]).reshape(HF, H)
    amat = jnp.concatenate([a_l, a_r], axis=1)                       # [HF, 2H]
    w32 = w.astype(jnp.float32)
    w_full = jnp.concatenate([w32, w32 @ amat], axis=1)              # [in_dim, HF + 2H]

    budget = _vmem_budget()
    rt = row_tile if row_tile is not None else _pick_row_tile(N)
    proj = _project(x.astype(jnp.float32), w_full, row_tile=rt, vmem_limit=budget)

    h = proj[:, :HF]                     # [N, H*F]
    el_t = proj[:, HF:HF + H].T          # [H, N]   tiny transpose: src scores on lanes
    er = proj[:, HF + H:]                # [N, H]

    adj_t = adj if adj_layout == "dst_src" else adj.T                # [N_dst, N_src]
    adj_t = adj_t.astype(jnp.bfloat16)   # 0/1 exact in bf16; halves the dominant HBM read

    attn_bytes = jnp.dtype(attn_dtype).itemsize if return_attention else 0
    dt = dst_tile if dst_tile is not None else _pick_dst_tile(N, HF, H, attn_bytes, budget)
    assert N % dt == 0 and (dt % 8 == 0 or dt == N)
    n_dst_tiles = N // dt

    in_specs = [
        pl.BlockSpec((N, HF), lambda d: (0, 0)),      # h: full source set resident
        pl.BlockSpec((H, N), lambda d: (0, 0)),       # el (src scores, src on lanes)
        pl.BlockSpec((dt, H), lambda d: (d, 0)),      # er (dst scores)
        pl.BlockSpec((dt, N), lambda d: (d, 0)),      # adjacency (dst-major, bf16)
    ]
    out_spec_h = pl.BlockSpec((dt, HF), lambda d: (d, 0))
    cparams = pltpu.CompilerParams(
        dimension_semantics=("parallel",),            # dst tiles shard across TCs on v7x
        vmem_limit_bytes=budget)
    cost = pl.CostEstimate(
        flops=int(H * N * N * (2 * F + 8)),
        transcendentals=int(H * N * N),
        bytes_accessed=int(2 * N * N + attn_bytes * H * N * N
                           + n_dst_tiles * (4 * N * HF + 4 * H * N)
                           + 4 * N * HF + 4 * N * H),
    )

    if return_attention:
        kernel = functools.partial(gat_attend_kernel, neg_slope=neg_slope,
                                   num_heads=H, out_feats=F)
        h_out, attn = pl.pallas_call(
            kernel,
            out_shape=(jax.ShapeDtypeStruct((N, HF), jnp.float32),
                       jax.ShapeDtypeStruct((H, N, N), attn_dtype)),  # [H, N_dst, N_src]
            grid=(n_dst_tiles,),
            in_specs=in_specs,
            out_specs=(out_spec_h,
                       pl.BlockSpec((H, dt, N), lambda d: (0, d, 0))),
            compiler_params=cparams,
            cost_estimate=cost,
        )(h, el_t, er, adj_t)
        return h_out, attn   # attention returned dst-major (no O(N^2) wrapper transpose)

    kernel = functools.partial(gat_attend_kernel_noattn, neg_slope=neg_slope,
                               num_heads=H, out_feats=F)
    h_out = pl.pallas_call(
        kernel,
        out_shape=jax.ShapeDtypeStruct((N, HF), jnp.float32),
        grid=(n_dst_tiles,),
        in_specs=in_specs,
        out_specs=out_spec_h,
        compiler_params=cparams,
        cost_estimate=cost,
    )(h, el_t, er, adj_t)
    return h_out, None


# ---------------------------------------------------------------------------
# Pure-JAX reference mirroring the PyTorch / DGL forward
# ---------------------------------------------------------------------------
def ref_gat(x, adj, w, attn_l, attn_r, *, num_heads, out_feats, neg_slope=0.2):
    h = x @ w
    h3 = h.reshape(-1, num_heads, out_feats)
    el = jnp.sum(h3 * attn_l[None], axis=-1)          # [N, H]
    er = jnp.sum(h3 * attn_r[None], axis=-1)          # [N, H]
    e = el[:, None, :] + er[None, :, :]               # [Ns, Nd, H]
    e = jnp.where(e > 0, e, neg_slope * e)
    mask = adj[:, :, None] > 0
    e = jnp.where(mask, e, -1e30)
    p = jnp.exp(e - jnp.max(e, axis=0, keepdims=True)) * adj[:, :, None]
    denom = jnp.sum(p, axis=0, keepdims=True)
    a = p / jnp.where(denom > 0, denom, 1.0)
    rst = jnp.einsum('uvh,uhf->vhf', a, h3)
    return rst.reshape(-1, num_heads * out_feats), jnp.transpose(a, (2, 1, 0))  # [H, Nd, Ns]


if __name__ == "__main__":
    # Small deterministic example consistent with CustomGATLayer(in_dim, out_dim, num_heads=4)
    N = 256
    in_dim = 32
    out_dim = 8
    num_heads = 4

    key = jax.random.PRNGKey(0)
    k_x, k_w, k_al, k_ar = jax.random.split(key, 4)

    x = jax.random.normal(k_x, (N, in_dim), dtype=jnp.float32)
    # Parameter shapes per GATConv.__init__: fc Linear(in_dim, H*F, bias=False),
    # attn_l / attn_r (1, H, F) stored flat as (H, F).
    w = jax.random.normal(k_w, (in_dim, num_heads * out_dim), dtype=jnp.float32) \
        * (2.0 / (in_dim + num_heads * out_dim)) ** 0.5
    attn_l = jax.random.normal(k_al, (num_heads, out_dim), dtype=jnp.float32) * 0.1
    attn_r = jax.random.normal(k_ar, (num_heads, out_dim), dtype=jnp.float32) * 0.1

    # Deterministic graph: self-loops (in-degree >= 1, as DGL requires) + ring + skip edge.
    adj_np = np.eye(N, dtype=np.float32)
    for u in range(N):
        adj_np[u, (u + 1) % N] = 1.0
        adj_np[u, (u + 5) % N] = 1.0
    adj = jnp.asarray(adj_np)                               # src-major f32, for the reference
    adj_dst = jnp.asarray(adj_np.T, dtype=jnp.bfloat16)     # dst-major bf16, hoisted once

    h_out, attn = custom_gat_layer(
        x, adj_dst, w, attn_l, attn_r, num_heads=num_heads, out_feats=out_dim,
        adj_layout="dst_src", return_attention=True)
    h_out = jax.block_until_ready(h_out)
    attn = jax.block_until_ready(attn)

    # Correctness check vs. f32 reference (tolerance relaxed for the EUP approx reciprocal).
    h_ref, a_ref = ref_gat(x, adj, w, attn_l, attn_r,
                           num_heads=num_heads, out_feats=out_dim)
    np.testing.assert_allclose(np.asarray(h_out), np.asarray(h_ref), rtol=5e-3, atol=5e-3)
    np.testing.assert_allclose(np.asarray(attn), np.asarray(a_ref), rtol=5e-3, atol=5e-3)

    # No-attention path (skips the dense [H, N, N] writeback entirely).
    h_out2, attn2 = custom_gat_layer(
        x, adj_dst, w, attn_l, attn_r, num_heads=num_heads, out_feats=out_dim,
        adj_layout="dst_src", return_attention=False)
    h_out2 = jax.block_until_ready(h_out2)
    np.testing.assert_allclose(np.asarray(h_out2), np.asarray(h_ref), rtol=5e-3, atol=5e-3)
    assert attn2 is None

    print("KERNEL_OK")
</pallas_src>

<mosaic_0001>
module attributes {stable_mosaic.version = 11 : i64} {
  func.func @gat_project_kernel(%arg0: i32, %arg1: memref<256x32xf32, #tpu.memory_space<vmem>>, %arg2: memref<32x40xf32, #tpu.memory_space<vmem>>, %arg3: memref<256x40xf32, #tpu.memory_space<vmem>>) attributes {dimension_semantics = [#tpu.dimension_semantics<parallel>], iteration_bounds = array<i64: 1>, scalar_prefetch = 0 : i64, scratch_operands = 0 : i64, tpu.core_type = #tpu.core_type<tc>, window_params = [{transform_indices = @transform_0, window_bounds = array<i64: 256, 32>}, {pipeline_mode = #tpu.pipeline_mode<synchronous>, transform_indices = @transform_1, window_bounds = array<i64: 32, 40>}, {transform_indices = @transform_2, window_bounds = array<i64: 256, 40>}]} {
    %c0 = arith.constant 0 : index
    %c0_0 = arith.constant 0 : index
    %0 = vector.load %arg1[%c0, %c0_0] : memref<256x32xf32, #tpu.memory_space<vmem>>, vector<256x32xf32>
    %c0_1 = arith.constant 0 : index
    %c0_2 = arith.constant 0 : index
    %1 = vector.load %arg2[%c0_1, %c0_2] : memref<32x40xf32, #tpu.memory_space<vmem>>, vector<32x40xf32>
    %cst = arith.constant dense<0.000000e+00> : vector<256x40xf32>
    %2 = tpu.matmul %0, %1, %cst {dimension_numbers = #tpu.dot_dimension_numbers<[1], [0], [0], [1], [0, 0, 1, 1], [], []>} : vector<256x32xf32>, vector<32x40xf32>, vector<256x40xf32> -> vector<256x40xf32>
    %c0_3 = arith.constant 0 : index
    %c0_4 = arith.constant 0 : index
    %3 = vector.load %arg3[%c0_3, %c0_4] : memref<256x40xf32, #tpu.memory_space<vmem>>, vector<256x40xf32>
    tpu.vector_store %arg3[%c0_3, %c0_4], %2 {strides = array<i32>} : memref<256x40xf32, #tpu.memory_space<vmem>>, vector<256x40xf32>,
    return
  }
  func.func @transform_0(%arg0: i32) -> (i32, i32) {
    %c0_i32 = arith.constant 0 : i32
    %c0_i32_0 = arith.constant 0 : i32
    return %arg0, %c0_i32 : i32, i32
  }
  func.func @transform_1(%arg0: i32) -> (i32, i32) {
    %c0_i32 = arith.constant 0 : i32
    %c0_i32_0 = arith.constant 0 : i32
    %c0_i32_1 = arith.constant 0 : i32
    return %c0_i32, %c0_i32_0 : i32, i32
  }
  func.func @transform_2(%arg0: i32) -> (i32, i32) {
    %c0_i32 = arith.constant 0 : i32
    %c0_i32_0 = arith.constant 0 : i32
    return %arg0, %c0_i32 : i32, i32
  }
}

</mosaic_0001>

<bundles_post_ra>
// kernel: tpu_custom_call.1
= control target key start
LH: loop header
LB: loop body
LE: loop exit
PB: predicated region body
PF: predicated region fallthrough
CT: control target
= control target key end

     0   :  { %vm47_vm0 = vcmask 261120   ;;  %vm369_vm1 = vcmask 326656   ;;  %s821_s1 = inlined_call_operand.vmem [shape: f32[32,40], index: 1, kind: input, shape index: {}]   ;;  %s822_s0 = inlined_call_operand.vmem [shape: f32[256,32], index: 0, kind: input, shape index: {}]   ;;  %s823_s2 = inlined_call_operand.vmem [shape: f32[256,40], index: 2, kind: output, shape index: {}]  }
   0x1   :  { %v46_v0 = vld [vmem:[%s821_s1 + $0x18] sm:$0xff]  ;;  %v45_v1 = vld [vmem:[%s821_s1 + $0x10] sm:$0xff]  ;;  %v44_v2 = vld [vmem:[%s821_s1 + $0x8] sm:$0xff] }
   0x2   :  { %474 = vmatprep.subr.mxu0 %v46_v0  ;;  %530 = vmatprep.subr.mxu1 %v46_v0  ;;  %v43_v3 = vld [vmem:[%s821_s1] sm:$0xff]  ;;  %v12_v6 = vld [vmem:[%s822_s0 + $0x8] sm:$0xff]  ;;  %v13_v8 = vld [vmem:[%s822_s0 + $0x10] sm:$0xff] }
   0x3   :  { %475 = vmatpush3.msra.mxu0 %v46_v0  ;;  %534 = vmatpush3.msra.mxu1 %v46_v0  ;;  %v11_v4 = vld [vmem:[%s822_s0] sm:$0xff]  ;;  %v28_v7 = vld [vmem:[%s822_s0 + $0x88] sm:$0xff]  ;;  %v29_v9 = vld [vmem:[%s822_s0 + $0x90] sm:$0xff] }
   0x4   :  { %476 = vmatprep.subr.mxu0 %v45_v1  ;;  %531 = vmatprep.subr.mxu1 %v45_v1  ;;  %v27_v5 = vld [vmem:[%s822_s0 + $0x80] sm:$0xff]  ;;  %v14_v10 = vld [vmem:[%s822_s0 + $0x18] sm:$0xff]  ;;  %v16_v14 = vld [vmem:[%s822_s0 + $0x28] sm:$0xff] }
   0x5   :  { %477 = vmatpush3.msra.mxu0 %v45_v1  ;;  %535 = vmatpush3.msra.mxu1 %v45_v1  ;;  %v30_v11 = vld [vmem:[%s822_s0 + $0x98] sm:$0xff]  ;;  %v15_v12 = vld [vmem:[%s822_s0 + $0x20] sm:$0xff]  ;;  %v32_v15 = vld [vmem:[%s822_s0 + $0xa8] sm:$0xff] }
   0x6   :  { %478 = vmatprep.subr.mxu0 %v44_v2  ;;  %532 = vmatprep.subr.mxu1 %v44_v2  ;;  %v31_v13 = vld [vmem:[%s822_s0 + $0xa0] sm:$0xff]  ;;  %v17_v16 = vld [vmem:[%s822_s0 + $0x30] sm:$0xff]  ;;  %v18_v18 = vld [vmem:[%s822_s0 + $0x38] sm:$0xff] }
   0x7   :  { %479 = vmatpush3.msra.mxu0 %v44_v2  ;;  %536 = vmatpush3.msra.mxu1 %v44_v2  ;;  %v33_v17 = vld [vmem:[%s822_s0 + $0xb0] sm:$0xff]  ;;  %v34_v19 = vld [vmem:[%s822_s0 + $0xb8] sm:$0xff]  ;;  %v19_v20 = vld [vmem:[%s822_s0 + $0x40] sm:$0xff] }
   0x8   :  { %480 = vmatprep.subr.mxu0 %v43_v3  ;;  %533 = vmatprep.subr.mxu1 %v43_v3  ;;  %v35_v21 = vld [vmem:[%s822_s0 + $0xc0] sm:$0xff]  ;;  %v20_v22 = vld [vmem:[%s822_s0 + $0x48] sm:$0xff]  ;;  %v21_v24 = vld [vmem:[%s822_s0 + $0x50] sm:$0xff] }
   0x9   :  { %481 = vmatpush3.msra.mxu0 %v43_v3  ;;  %537 = vmatpush3.msra.mxu1 %v43_v3  ;;  %v36_v23 = vld [vmem:[%s822_s0 + $0xc8] sm:$0xff]  ;;  %v37_v25 = vld [vmem:[%s822_s0 + $0xd0] sm:$0xff]  ;;  %v22_v26 = vld [vmem:[%s822_s0 + $0x58] sm:$0xff] }
   0xa   :  { %482 = vmatprep.mubr.msk.f32.mxu0 %vm47_vm0, %v11_v4  ;;  %506 = vmatprep.mubr.msk.f32.mxu1 %vm47_vm0, %v27_v5  ;;  %v38_v27 = vld [vmem:[%s822_s0 + $0xd8] sm:$0xff]  ;;  %v23_v28 = vld [vmem:[%s822_s0 + $0x60] sm:$0xff]  ;;  %v24_v30 = vld [vmem:[%s822_s0 + $0x68] sm:$0xff] }
   0xb   :  { %483 = vmatmul.mubr.msk.f32.vlgmr.msra.gmra.mxu0 %vm47_vm0, %v12_v6  ;;  %507 = vmatmul.mubr.msk.f32.vlgmr.msra.gmra.mxu1 %vm47_vm0, %v28_v7  ;;  %v39_v29 = vld [vmem:[%s822_s0 + $0xe0] sm:$0xff]  ;;  %v40_v31 = vld [vmem:[%s822_s0 + $0xe8] sm:$0xff]  ;;  %v25_v32 = vld [vmem:[%s822_s0 + $0x70] sm:$0xff] }
   0xc   :  { %485 = vmatprep.mubr.msk.f32.mxu0 %vm47_vm0, %v13_v8  ;;  %509 = vmatprep.mubr.msk.f32.mxu1 %vm47_vm0, %v29_v9  ;;  %v41_v33 = vld [vmem:[%s822_s0 + $0xf0] sm:$0xff]  ;;  %v26_v34 = vld [vmem:[%s822_s0 + $0x78] sm:$0xff] }
   0xd   :  { %v42_v35 = vld [vmem:[%s822_s0 + $0xf8] sm:$0xff] }
   0xf   :  { %486 = vmatmul.mubr.msk.f32.gmra.mxu0 %vm47_vm0, %v14_v10  ;;  %510 = vmatmul.mubr.msk.f32.gmra.mxu1 %vm47_vm0, %v30_v11 }
  0x10   :  { %488 = vmatprep.mubr.msk.f32.mxu0 %vm47_vm0, %v15_v12  ;;  %512 = vmatprep.mubr.msk.f32.mxu1 %vm47_vm0, %v31_v13 }
  0x13   :  { %489 = vmatmul.mubr.msk.f32.gmra.mxu0 %vm47_vm0, %v16_v14  ;;  %513 = vmatmul.mubr.msk.f32.gmra.mxu1 %vm47_vm0, %v32_v15 }
  0x14   :  { %491 = vmatprep.mubr.msk.f32.mxu0 %vm47_vm0, %v17_v16  ;;  %515 = vmatprep.mubr.msk.f32.mxu1 %vm47_vm0, %v33_v17 }
  0x17   :  { %492 = vmatmul.mubr.msk.f32.gmra.mxu0 %vm47_vm0, %v18_v18  ;;  %516 = vmatmul.mubr.msk.f32.gmra.mxu1 %vm47_vm0, %v34_v19 }
  0x18   :  { %494 = vmatprep.mubr.msk.f32.mxu0 %vm47_vm0, %v19_v20  ;;  %518 = vmatprep.mubr.msk.f32.mxu1 %vm47_vm0, %v35_v21 }
  0x1b   :  { %495 = vmatmul.mubr.msk.f32.gmra.mxu0 %vm47_vm0, %v20_v22  ;;  %519 = vmatmul.mubr.msk.f32.gmra.mxu1 %vm47_vm0, %v36_v23 }
  0x1c   :  { %497 = vmatprep.mubr.msk.f32.mxu0 %vm47_vm0, %v21_v24  ;;  %521 = vmatprep.mubr.msk.f32.mxu1 %vm47_vm0, %v37_v25 }
  0x1f   :  { %498 = vmatmul.mubr.msk.f32.gmra.mxu0 %vm47_vm0, %v22_v26  ;;  %522 = vmatmul.mubr.msk.f32.gmra.mxu1 %vm47_vm0, %v38_v27 }
  0x20   :  { %500 = vmatprep.mubr.msk.f32.mxu0 %vm47_vm0, %v23_v28  ;;  %524 = vmatprep.mubr.msk.f32.mxu1 %vm47_vm0, %v39_v29 }
  0x23   :  { %501 = vmatmul.mubr.msk.f32.gmra.mxu0 %vm47_vm0, %v24_v30  ;;  %525 = vmatmul.mubr.msk.f32.gmra.mxu1 %vm47_vm0, %v40_v31 }
  0x24   :  { %503 = vmatprep.mubr.msk.f32.mxu0 %vm47_vm0, %v25_v32  ;;  %527 = vmatprep.mubr.msk.f32.mxu1 %vm47_vm0, %v41_v33 }
  0x27   :  { %504 = vmatmul.mubr.msk.f32.gmra.mxu0 %vm47_vm0, %v26_v34  ;;  %528 = vmatmul.mubr.msk.f32.gmra.mxu1 %vm47_vm0, %v42_v35 }
  0xcb   :  { %v484_v36 = vpop.f32.mrf.mxu0  ;;  %v508_v37 = vpop.f32.mrf.mxu1 }
  0xcc   :  { %371 = vst.msk [vmem:[%s823_s2 + $0x8] sm:$0xff] %vm369_vm1, %v484_v36  ;;  %387 = vst.msk [vmem:[%s823_s2 + $0x88] sm:$0xff] %vm369_vm1, %v508_v37 }
  0xcd   :  { %v210_v38 = vpop.f32.mrf.mxu0  ;;  %v290_v39 = vpop.f32.mrf.mxu1 }
  0xce   :  { %370 = vst.msk [vmem:[%s823_s2] sm:$0xff] %vm369_vm1, %v210_v38  ;;  %386 = vst.msk [vmem:[%s823_s2 + $0x80] sm:$0xff] %vm369_vm1, %v290_v39 }
  0xcf   :  { %v487_v40 = vpop.f32.mrf.mxu0  ;;  %v511_v41 = vpop.f32.mrf.mxu1 }
  0xd0   :  { %373 = vst.msk [vmem:[%s823_s2 + $0x18] sm:$0xff] %vm369_vm1, %v487_v40  ;;  %389 = vst.msk [vmem:[%s823_s2 + $0x98] sm:$0xff] %vm369_vm1, %v511_v41 }
  0xd1   :  { %v220_v42 = vpop.f32.mrf.mxu0  ;;  %v300_v43 = vpop.f32.mrf.mxu1 }
  0xd2   :  { %372 = vst.msk [vmem:[%s823_s2 + $0x10] sm:$0xff] %vm369_vm1, %v220_v42  ;;  %388 = vst.msk [vmem:[%s823_s2 + $0x90] sm:$0xff] %vm369_vm1, %v300_v43 }
  0xd3   :  { %v490_v44 = vpop.f32.mrf.mxu0  ;;  %v514_v45 = vpop.f32.mrf.mxu1 }
  0xd4   :  { %375 = vst.msk [vmem:[%s823_s2 + $0x28] sm:$0xff] %vm369_vm1, %v490_v44  ;;  %391 = vst.msk [vmem:[%s823_s2 + $0xa8] sm:$0xff] %vm369_vm1, %v514_v45 }
  0xd5   :  { %v230_v46 = vpop.f32.mrf.mxu0  ;;  %v310_v47 = vpop.f32.mrf.mxu1 }
  0xd6   :  { %374 = vst.msk [vmem:[%s823_s2 + $0x20] sm:$0xff] %vm369_vm1, %v230_v46  ;;  %390 = vst.msk [vmem:[%s823_s2 + $0xa0] sm:$0xff] %vm369_vm1, %v310_v47 }
  0xd7   :  { %v493_v48 = vpop.f32.mrf.mxu0  ;;  %v517_v49 = vpop.f32.mrf.mxu1 }
  0xd8   :  { %377 = vst.msk [vmem:[%s823_s2 + $0x38] sm:$0xff] %vm369_vm1, %v493_v48  ;;  %393 = vst.msk [vmem:[%s823_s2 + $0xb8] sm:$0xff] %vm369_vm1, %v517_v49 }
  0xd9   :  { %v240_v50 = vpop.f32.mrf.mxu0  ;;  %v320_v51 = vpop.f32.mrf.mxu1 }
  0xda   :  { %376 = vst.msk [vmem:[%s823_s2 + $0x30] sm:$0xff] %vm369_vm1, %v240_v50  ;;  %392 = vst.msk [vmem:[%s823_s2 + $0xb0] sm:$0xff] %vm369_vm1, %v320_v51 }
  0xdb   :  { %v496_v52 = vpop.f32.mrf.mxu0  ;;  %v520_v53 = vpop.f32.mrf.mxu1 }
  0xdc   :  { %379 = vst.msk [vmem:[%s823_s2 + $0x48] sm:$0xff] %vm369_vm1, %v496_v52  ;;  %395 = vst.msk [vmem:[%s823_s2 + $0xc8] sm:$0xff] %vm369_vm1, %v520_v53 }
  0xdd   :  { %v250_v54 = vpop.f32.mrf.mxu0  ;;  %v330_v55 = vpop.f32.mrf.mxu1 }
  0xde   :  { %378 = vst.msk [vmem:[%s823_s2 + $0x40] sm:$0xff] %vm369_vm1, %v250_v54  ;;  %394 = vst.msk [vmem:[%s823_s2 + $0xc0] sm:$0xff] %vm369_vm1, %v330_v55 }
  0xdf   :  { %v499_v56 = vpop.f32.mrf.mxu0  ;;  %v523_v57 = vpop.f32.mrf.mxu1 }
  0xe0   :  { %381 = vst.msk [vmem:[%s823_s2 + $0x58] sm:$0xff] %vm369_vm1, %v499_v56  ;;  %397 = vst.msk [vmem:[%s823_s2 + $0xd8] sm:$0xff] %vm369_vm1, %v523_v57 }
  0xe1   :  { %v260_v58 = vpop.f32.mrf.mxu0  ;;  %v340_v59 = vpop.f32.mrf.mxu1 }
  0xe2   :  { %380 = vst.msk [vmem:[%s823_s2 + $0x50] sm:$0xff] %vm369_vm1, %v260_v58  ;;  %396 = vst.msk [vmem:[%s823_s2 + $0xd0] sm:$0xff] %vm369_vm1, %v340_v59 }
  0xe3   :  { %v502_v60 = vpop.f32.mrf.mxu0  ;;  %v526_v61 = vpop.f32.mrf.mxu1 }
  0xe4   :  { %383 = vst.msk [vmem:[%s823_s2 + $0x68] sm:$0xff] %vm369_vm1, %v502_v60  ;;  %399 = vst.msk [vmem:[%s823_s2 + $0xe8] sm:$0xff] %vm369_vm1, %v526_v61 }
  0xe5   :  { %v270_v62 = vpop.f32.mrf.mxu0  ;;  %v350_v63 = vpop.f32.mrf.mxu1 }
  0xe6   :  { %382 = vst.msk [vmem:[%s823_s2 + $0x60] sm:$0xff] %vm369_vm1, %v270_v62  ;;  %398 = vst.msk [vmem:[%s823_s2 + $0xe0] sm:$0xff] %vm369_vm1, %v350_v63 }
  0xe7   :  { %v505_v0 = vpop.f32.mrf.mxu0  ;;  %v529_v1 = vpop.f32.mrf.mxu1 }
  0xe8   :  { %385 = vst.msk [vmem:[%s823_s2 + $0x78] sm:$0xff] %vm369_vm1, %v505_v0  ;;  %401 = vst.msk [vmem:[%s823_s2 + $0xf8] sm:$0xff] %vm369_vm1, %v529_v1 }
  0xe9   :  { %v280_v2 = vpop.f32.mrf.mxu0  ;;  %v360_v3 = vpop.f32.mrf.mxu1 }
  0xea   :  { %384 = vst.msk [vmem:[%s823_s2 + $0x70] sm:$0xff] %vm369_vm1, %v280_v2  ;;  %400 = vst.msk [vmem:[%s823_s2 + $0xf0] sm:$0xff] %vm369_vm1, %v360_v3 }

</bundles_post_ra>
